<compile_context>
chip_gen: v7x
topology: tpu7x:2x2x1
jax: 0.10.0
libtpu: 0.0.40
codegen_flags: <defaults>
</compile_context>

<pallas_src>
import functools

import jax
import jax.numpy as jnp
from jax import lax
from jax.experimental import pallas as pl
from jax.experimental.pallas import tpu as pltpu

K = 3  # module kernel_size (pad = (K-1)//2 = 1)


def _round_up(x, m):
    return ((x + m - 1) // m) * m


# ---------------------------------------------------------------------------
# Pallas kernel: one fused stage = two independent separable 1-D convs.
#   w    : (2, Cout, K*Cin)   compute dtype (bf16/f32)
#   b    : (2, Cout, 1)       f32
#   taps : (2, K*Cin, Mp)     compute dtype   (M on lanes -> full-width loads)
#   out  : (2, Cout, Mp)      f32             (M on lanes -> full-width stores)
# grid = (2, Mp // TM), both axes "parallel" (megacore-shardable on v7x).
# ---------------------------------------------------------------------------
def _dual_conv_kernel(w_ref, b_ref, taps_ref, o_ref):
    acc = jnp.dot(w_ref[0], taps_ref[0], preferred_element_type=jnp.float32)
    o_ref[0] = acc + b_ref[0]


def _dual_conv(taps_a, taps_b, w_a, w_b, b_a, b_b, compute_dtype, tm_max=512):
    """Run two same-shaped convs (already im2col'd) in one pallas_call.

    taps_*: (K*Cin, M)   w_*: (Cout, K*Cin)   b_*: (Cout,)
    Returns (2, Cout, M) float32.
    """
    KCin, M = taps_a.shape
    Cout = w_a.shape[0]

    TM = min(tm_max, _round_up(M, 128))       # lane-dense tile, mult. of 128
    Mp = _round_up(M, TM)

    def prep(t):
        t = t.astype(compute_dtype)
        return jnp.pad(t, ((0, 0), (0, Mp - M)))

    taps = jnp.stack([prep(taps_a), prep(taps_b)], axis=0)          # (2,KCin,Mp)
    w = jnp.stack([w_a, w_b], axis=0).astype(compute_dtype)         # (2,Cout,KCin)
    b = jnp.stack([b_a, b_b], axis=0).astype(jnp.float32).reshape(2, Cout, 1)

    # Per-step VMEM (double-buffered): taps 2*KCin*TM*2B + out 2*Cout*TM*4B
    # + tiny weights/bias  ->  well under 1 MiB even for TM=512.
    out = pl.pallas_call(
        _dual_conv_kernel,
        out_shape=jax.ShapeDtypeStruct((2, Cout, Mp), jnp.float32),
        grid_spec=pltpu.PrefetchScalarGridSpec(
            num_scalar_prefetch=0,
            grid=(2, Mp // TM),
            in_specs=[
                pl.BlockSpec((1, Cout, KCin), lambda p, m: (p, 0, 0)),
                pl.BlockSpec((1, Cout, 1), lambda p, m: (p, 0, 0)),
                pl.BlockSpec((1, KCin, TM), lambda p, m: (p, 0, m)),
            ],
            out_specs=pl.BlockSpec((1, Cout, TM), lambda p, m: (p, 0, m)),
        ),
        compiler_params=pltpu.CompilerParams(
            dimension_semantics=("parallel", "parallel"),
            vmem_limit_bytes=32 * 1024 * 1024),
    )(w, b, taps)
    return out[:, :, :M]


# ---------------------------------------------------------------------------
# Glue (fused by XLA): one-axis im2col gather producing the (K*Cin, M) operand
# directly in its final layout.  Input/output layout is CNHW.
# ---------------------------------------------------------------------------
def _gather_taps(x_cnhw, axis, stride):
    Cin, N, H, W = x_cnhw.shape
    if axis == 'h':
        kh, kw, ph, pw = K, 1, 1, 0
    else:
        kh, kw, ph, pw = 1, K, 0, 1
    Hout = (H + 2 * ph - kh) // stride + 1
    Wout = (W + 2 * pw - kw) // stride + 1

    xp = jnp.pad(x_cnhw, ((0, 0), (0, 0), (ph, ph), (pw, pw)))
    taps = []
    for k in range(K):
        oh = k if axis == 'h' else 0
        ow = k if axis == 'w' else 0
        t = lax.slice(
            xp,
            (0, 0, oh, ow),
            (Cin, N, oh + stride * (Hout - 1) + 1, ow + stride * (Wout - 1) + 1),
            (1, 1, stride, stride))
        taps.append(t)                                  # (Cin, N, Hout, Wout)
    taps = jnp.stack(taps, axis=0)                      # (K, Cin, N, Hout, Wout)
    M = N * Hout * Wout
    return taps.reshape(K * Cin, M), Hout, Wout


def _flatten_weight(w_oihw, axis, cin):
    """Split a (Cout, cin+1, kh, kw) weight into the flattened main weight
    (Cout, K*cin) matching the tap row ordering [k*cin + c], and the coord-
    channel taps (Cout, K)."""
    if axis == 'h':
        w = w_oihw[:, :, :, 0]                          # (Cout, cin+1, K)
    else:
        w = w_oihw[:, :, 0, :]                          # (Cout, cin+1, K)
    cout = w.shape[0]
    w_main = jnp.transpose(w[:, :cin, :], (0, 2, 1)).reshape(cout, K * cin)
    w_coord = w[:, cin, :]                              # (Cout, K)
    return w_main, w_coord


def _coord_bias(w_coord, length_in, stride, length_out):
    """Conv contribution of the AddCoords channel: an affine function of the
    output index along the conv axis.  Returns (Cout, length_out) f32."""
    coord = (jnp.arange(length_in, dtype=jnp.float32) / (length_in - 1)) * 2.0 - 1.0
    cpad = jnp.pad(coord, (1, 1))                       # zero padding like conv
    idx = stride * jnp.arange(length_out)[:, None] + jnp.arange(K)[None, :]
    g = cpad[idx]                                       # (length_out, K)
    # tiny; plain VPU broadcast-mul-sum (avoid low-precision matmul defaults)
    return jnp.sum(w_coord[:, None, :] * g[None, :, :], axis=-1)  # (Cout, Lout)


# ---------------------------------------------------------------------------
# AC_Conv_down forward (Pallas-backed).  Input/output NCHW.
# ---------------------------------------------------------------------------
def ac_conv_down_forward(raw_nchw, params, compute_dtype=jnp.bfloat16,
                         tm_max=512):
    N, Cin, H, W = raw_nchw.shape
    Cout = params['w_x_i'].shape[0]
    x_cnhw = jnp.transpose(raw_nchw, (1, 0, 2, 3)).astype(jnp.float32)

    # -------- stage 1: stride-2 downsample convs (x: along H, y: along W) ---
    taps_x, H1, W1 = _gather_taps(x_cnhw, 'h', 2)       # conv_x_i
    taps_y, _, _ = _gather_taps(x_cnhw, 'w', 2)         # conv_y_j
    wxi, wxi_c = _flatten_weight(params['w_x_i'], 'h', Cin)
    wyj, wyj_c = _flatten_weight(params['w_y_j'], 'w', Cin)

    out1 = _dual_conv(taps_x, taps_y, wxi, wyj,
                      params['b_x_i'], params['b_y_j'],
                      compute_dtype, tm_max)
    out1 = out1.reshape(2, Cout, N, H1, W1)
    cb_x = _coord_bias(wxi_c, H, 2, H1)                 # row coord, h-conv
    cb_y = _coord_bias(wyj_c, W, 2, W1)                 # col coord, w-conv
    x1 = out1[0] + cb_x[:, None, :, None]               # (Cout, N, H1, W1)
    y1 = out1[1] + cb_y[:, None, None, :]

    # -------- stage 2: stride-1 convs (x: along W, y: along H) --------------
    taps_xj, H2, W2 = _gather_taps(x1, 'w', 1)          # conv_x_j on x (col coord)
    taps_yi, _, _ = _gather_taps(y1, 'h', 1)            # conv_y_i on y (row coord)
    wxj, wxj_c = _flatten_weight(params['w_x_j'], 'w', Cout)
    wyi, wyi_c = _flatten_weight(params['w_y_i'], 'h', Cout)

    out2 = _dual_conv(taps_xj, taps_yi, wxj, wyi,
                      params['b_x_j'], params['b_y_i'],
                      compute_dtype, tm_max)
    out2 = out2.reshape(2, Cout, N, H2, W2)
    cb_xj = _coord_bias(wxj_c, W1, 1, W2)
    cb_yi = _coord_bias(wyi_c, H1, 1, H2)
    x2 = out2[0] + cb_xj[:, None, None, :]
    y2 = out2[1] + cb_yi[:, None, :, None]

    return (jnp.transpose(x2, (1, 0, 2, 3)),
            jnp.transpose(y2, (1, 0, 2, 3)))


# ---------------------------------------------------------------------------
# Deterministic parameter init (PyTorch Conv2d default-style uniform bounds).
# ---------------------------------------------------------------------------
def init_params(key, in_dim, out_dim, kernel_size=3):
    def conv_init(k, cout, cin, kh, kw):
        fan_in = cin * kh * kw
        bound = 1.0 / (fan_in ** 0.5)
        kw_, kb_ = jax.random.split(k)
        w = jax.random.uniform(kw_, (cout, cin, kh, kw), jnp.float32,
                               -bound, bound)
        b = jax.random.uniform(kb_, (cout,), jnp.float32, -bound, bound)
        return w, b

    keys = jax.random.split(key, 4)
    w_x_i, b_x_i = conv_init(keys[0], out_dim, in_dim + 1, kernel_size, 1)
    w_x_j, b_x_j = conv_init(keys[1], out_dim, out_dim + 1, 1, kernel_size)
    w_y_i, b_y_i = conv_init(keys[2], out_dim, out_dim + 1, kernel_size, 1)
    w_y_j, b_y_j = conv_init(keys[3], out_dim, in_dim + 1, 1, kernel_size)
    return dict(w_x_i=w_x_i, b_x_i=b_x_i, w_x_j=w_x_j, b_x_j=b_x_j,
                w_y_i=w_y_i, b_y_i=b_y_i, w_y_j=w_y_j, b_y_j=b_y_j)


# ---------------------------------------------------------------------------
# Pure-JAX reference (NCHW, lax.conv == PyTorch cross-correlation) for checks.
# ---------------------------------------------------------------------------
def _conv_ref(x, w, b, stride, pad):
    out = lax.conv_general_dilated(
        x, w, window_strides=(stride, stride),
        padding=((pad[0], pad[0]), (pad[1], pad[1])),
        dimension_numbers=('NCHW', 'OIHW', 'NCHW'),
        precision=lax.Precision.HIGHEST)
    return out + b[None, :, None, None]


def _add_coords_ref(x_nchw):
    N, _, H, W = x_nchw.shape
    row = (jnp.arange(H, dtype=jnp.float32) / (H - 1)) * 2.0 - 1.0
    col = (jnp.arange(W, dtype=jnp.float32) / (W - 1)) * 2.0 - 1.0
    row = jnp.broadcast_to(row[None, None, :, None], (N, 1, H, W))
    col = jnp.broadcast_to(col[None, None, None, :], (N, 1, H, W))
    return (jnp.concatenate([x_nchw, row], axis=1),
            jnp.concatenate([x_nchw, col], axis=1))


def forward_ref(raw, params):
    x, y = _add_coords_ref(raw)
    x = _conv_ref(x, params['w_x_i'], params['b_x_i'], 2, (1, 0))
    y = _conv_ref(y, params['w_y_j'], params['b_y_j'], 2, (0, 1))
    x_i, x_j = _add_coords_ref(x)
    y_i, y_j = _add_coords_ref(y)
    x = _conv_ref(x_j, params['w_x_j'], params['b_x_j'], 1, (0, 1))
    y = _conv_ref(y_i, params['w_y_i'], params['b_y_i'], 1, (1, 0))
    return x, y


if __name__ == "__main__":
    key = jax.random.PRNGKey(0)
    k_par, k_in = jax.random.split(key)

    in_dim, out_dim = 4, 8
    raw = jax.random.normal(k_in, (2, in_dim, 16, 16), dtype=jnp.float32)
    params = init_params(k_par, in_dim, out_dim)

    ref_x, ref_y = forward_ref(raw, params)

    # f32 compute path: tight check of kernel / layout / coord-folding logic.
    fwd_f32 = jax.jit(functools.partial(ac_conv_down_forward,
                                        compute_dtype=jnp.float32))
    out_x, out_y = fwd_f32(raw, params)
    jax.block_until_ready((out_x, out_y))
    assert out_x.shape == (2, out_dim, 8, 8) and out_y.shape == (2, out_dim, 8, 8)
    assert jnp.allclose(out_x, ref_x, atol=1e-3, rtol=1e-3)
    assert jnp.allclose(out_y, ref_y, atol=1e-3, rtol=1e-3)

    # default bf16-input / f32-accumulate path (MXU-native): looser tolerance.
    fwd_bf16 = jax.jit(ac_conv_down_forward)
    out_xb, out_yb = fwd_bf16(raw, params)
    jax.block_until_ready((out_xb, out_yb))
    assert jnp.allclose(out_xb, ref_x, atol=5e-2, rtol=5e-2)
    assert jnp.allclose(out_yb, ref_y, atol=5e-2, rtol=5e-2)

    print("KERNEL_OK")
</pallas_src>

<mosaic_0001>
module attributes {stable_mosaic.version = 11 : i64} {
  func.func @_dual_conv_kernel(%arg0: i32, %arg1: i32, %arg2: memref<1x8x12xf32, #tpu.memory_space<vmem>>, %arg3: memref<1x8x1xf32, #tpu.memory_space<vmem>>, %arg4: memref<1x12x128xf32, #tpu.memory_space<vmem>>, %arg5: memref<1x8x128xf32, #tpu.memory_space<vmem>>) attributes {dimension_semantics = [#tpu.dimension_semantics<parallel>, #tpu.dimension_semantics<parallel>], iteration_bounds = array<i64: 2, 1>, scalar_prefetch = 0 : i64, scratch_operands = 0 : i64, tpu.core_type = #tpu.core_type<tc>, window_params = [{transform_indices = @transform_0, window_bounds = array<i64: 1, 8, 12>}, {transform_indices = @transform_1, window_bounds = array<i64: 1, 8, 1>}, {transform_indices = @transform_2, window_bounds = array<i64: 1, 12, 128>}, {transform_indices = @transform_3, window_bounds = array<i64: 1, 8, 128>}]} {
    %c0 = arith.constant 0 : index
    %c0_0 = arith.constant 0 : index
    %c0_1 = arith.constant 0 : index
    %0 = vector.load %arg2[%c0, %c0_0, %c0_1] : memref<1x8x12xf32, #tpu.memory_space<vmem>>, vector<1x8x12xf32>
    %1 = vector.shape_cast %0 : vector<1x8x12xf32> to vector<8x12xf32>
    %c0_2 = arith.constant 0 : index
    %c0_3 = arith.constant 0 : index
    %c0_4 = arith.constant 0 : index
    %2 = vector.load %arg4[%c0_2, %c0_3, %c0_4] : memref<1x12x128xf32, #tpu.memory_space<vmem>>, vector<1x12x128xf32>
    %3 = vector.shape_cast %2 : vector<1x12x128xf32> to vector<12x128xf32>
    %cst = arith.constant dense<0.000000e+00> : vector<8x128xf32>
    %4 = tpu.matmul %1, %3, %cst {dimension_numbers = #tpu.dot_dimension_numbers<[1], [0], [0], [1], [0, 0, 1, 1], [], []>} : vector<8x12xf32>, vector<12x128xf32>, vector<8x128xf32> -> vector<8x128xf32>
    %c0_5 = arith.constant 0 : index
    %c0_6 = arith.constant 0 : index
    %c0_7 = arith.constant 0 : index
    %5 = vector.load %arg3[%c0_5, %c0_6, %c0_7] : memref<1x8x1xf32, #tpu.memory_space<vmem>>, vector<1x8x1xf32>
    %6 = vector.shape_cast %5 : vector<1x8x1xf32> to vector<8x1xf32>
    %7 = vector.broadcast %6 : vector<8x1xf32> to vector<8x128xf32>
    %8 = arith.addf %4, %7 : vector<8x128xf32>
    %c0_8 = arith.constant 0 : index
    %c0_9 = arith.constant 0 : index
    %c0_10 = arith.constant 0 : index
    %9 = vector.load %arg5[%c0_8, %c0_9, %c0_10] : memref<1x8x128xf32, #tpu.memory_space<vmem>>, vector<1x8x128xf32>
    %10 = vector.shape_cast %9 : vector<1x8x128xf32> to vector<8x128xf32>
    %11 = vector.shape_cast %8 : vector<8x128xf32> to vector<1x8x128xf32>
    tpu.vector_store %arg5[%c0_8, %c0_9, %c0_10], %11 {strides = array<i32>} : memref<1x8x128xf32, #tpu.memory_space<vmem>>, vector<1x8x128xf32>,
    return
  }
  func.func @transform_0(%arg0: i32, %arg1: i32) -> (i32, i32, i32) {
    %c0_i32 = arith.constant 0 : i32
    %c0_i32_0 = arith.constant 0 : i32
    %c0_i32_1 = arith.constant 0 : i32
    return %arg0, %c0_i32, %c0_i32_0 : i32, i32, i32
  }
  func.func @transform_1(%arg0: i32, %arg1: i32) -> (i32, i32, i32) {
    %c0_i32 = arith.constant 0 : i32
    %c0_i32_0 = arith.constant 0 : i32
    %c0_i32_1 = arith.constant 0 : i32
    return %arg0, %c0_i32, %c0_i32_0 : i32, i32, i32
  }
  func.func @transform_2(%arg0: i32, %arg1: i32) -> (i32, i32, i32) {
    %c0_i32 = arith.constant 0 : i32
    %c0_i32_0 = arith.constant 0 : i32
    return %arg0, %c0_i32, %arg1 : i32, i32, i32
  }
  func.func @transform_3(%arg0: i32, %arg1: i32) -> (i32, i32, i32) {
    %c0_i32 = arith.constant 0 : i32
    %c0_i32_0 = arith.constant 0 : i32
    return %arg0, %c0_i32, %arg1 : i32, i32, i32
  }
}

module attributes {stable_mosaic.version = 11 : i64} {
  func.func @_dual_conv_kernel(%arg0: i32, %arg1: i32, %arg2: memref<1x8x24xf32, #tpu.memory_space<vmem>>, %arg3: memref<1x8x1xf32, #tpu.memory_space<vmem>>, %arg4: memref<1x24x128xf32, #tpu.memory_space<vmem>>, %arg5: memref<1x8x128xf32, #tpu.memory_space<vmem>>) attributes {dimension_semantics = [#tpu.dimension_semantics<parallel>, #tpu.dimension_semantics<parallel>], iteration_bounds = array<i64: 2, 1>, scalar_prefetch = 0 : i64, scratch_operands = 0 : i64, tpu.core_type = #tpu.core_type<tc>, window_params = [{transform_indices = @transform_0, window_bounds = array<i64: 1, 8, 24>}, {transform_indices = @transform_1, window_bounds = array<i64: 1, 8, 1>}, {transform_indices = @transform_2, window_bounds = array<i64: 1, 24, 128>}, {transform_indices = @transform_3, window_bounds = array<i64: 1, 8, 128>}]} {
    %c0 = arith.constant 0 : index
    %c0_0 = arith.constant 0 : index
    %c0_1 = arith.constant 0 : index
    %0 = vector.load %arg2[%c0, %c0_0, %c0_1] : memref<1x8x24xf32, #tpu.memory_space<vmem>>, vector<1x8x24xf32>
    %1 = vector.shape_cast %0 : vector<1x8x24xf32> to vector<8x24xf32>
    %c0_2 = arith.constant 0 : index
    %c0_3 = arith.constant 0 : index
    %c0_4 = arith.constant 0 : index
    %2 = vector.load %arg4[%c0_2, %c0_3, %c0_4] : memref<1x24x128xf32, #tpu.memory_space<vmem>>, vector<1x24x128xf32>
    %3 = vector.shape_cast %2 : vector<1x24x128xf32> to vector<24x128xf32>
    %cst = arith.constant dense<0.000000e+00> : vector<8x128xf32>
    %4 = tpu.matmul %1, %3, %cst {dimension_numbers = #tpu.dot_dimension_numbers<[1], [0], [0], [1], [0, 0, 1, 1], [], []>} : vector<8x24xf32>, vector<24x128xf32>, vector<8x128xf32> -> vector<8x128xf32>
    %c0_5 = arith.constant 0 : index
    %c0_6 = arith.constant 0 : index
    %c0_7 = arith.constant 0 : index
    %5 = vector.load %arg3[%c0_5, %c0_6, %c0_7] : memref<1x8x1xf32, #tpu.memory_space<vmem>>, vector<1x8x1xf32>
    %6 = vector.shape_cast %5 : vector<1x8x1xf32> to vector<8x1xf32>
    %7 = vector.broadcast %6 : vector<8x1xf32> to vector<8x128xf32>
    %8 = arith.addf %4, %7 : vector<8x128xf32>
    %c0_8 = arith.constant 0 : index
    %c0_9 = arith.constant 0 : index
    %c0_10 = arith.constant 0 : index
    %9 = vector.load %arg5[%c0_8, %c0_9, %c0_10] : memref<1x8x128xf32, #tpu.memory_space<vmem>>, vector<1x8x128xf32>
    %10 = vector.shape_cast %9 : vector<1x8x128xf32> to vector<8x128xf32>
    %11 = vector.shape_cast %8 : vector<8x128xf32> to vector<1x8x128xf32>
    tpu.vector_store %arg5[%c0_8, %c0_9, %c0_10], %11 {strides = array<i32>} : memref<1x8x128xf32, #tpu.memory_space<vmem>>, vector<1x8x128xf32>,
    return
  }
  func.func @transform_0(%arg0: i32, %arg1: i32) -> (i32, i32, i32) {
    %c0_i32 = arith.constant 0 : i32
    %c0_i32_0 = arith.constant 0 : i32
    %c0_i32_1 = arith.constant 0 : i32
    return %arg0, %c0_i32, %c0_i32_0 : i32, i32, i32
  }
  func.func @transform_1(%arg0: i32, %arg1: i32) -> (i32, i32, i32) {
    %c0_i32 = arith.constant 0 : i32
    %c0_i32_0 = arith.constant 0 : i32
    %c0_i32_1 = arith.constant 0 : i32
    return %arg0, %c0_i32, %c0_i32_0 : i32, i32, i32
  }
  func.func @transform_2(%arg0: i32, %arg1: i32) -> (i32, i32, i32) {
    %c0_i32 = arith.constant 0 : i32
    %c0_i32_0 = arith.constant 0 : i32
    return %arg0, %c0_i32, %arg1 : i32, i32, i32
  }
  func.func @transform_3(%arg0: i32, %arg1: i32) -> (i32, i32, i32) {
    %c0_i32 = arith.constant 0 : i32
    %c0_i32_0 = arith.constant 0 : i32
    return %arg0, %c0_i32, %arg1 : i32, i32, i32
  }
}

</mosaic_0001>

<bundles_post_ra>
// kernel: squeeze.10
= control target key start
LH: loop header
LB: loop body
LE: loop exit
PB: predicated region body
PF: predicated region fallthrough
CT: control target
= control target key end

     0   :  { %vm3_vm0 = vcmask 64512   ;;  %s264_s8 = smov 104   ;;  %s265_s17 = smov 112   ;;  %s547_s0 = inlined_call_operand.vmem [shape: f32[1,8,128], index: 0, kind: input, shape index: {}]   ;;  %s548_s1 = inlined_call_operand.vmem [shape: f32[8,2,8,8], index: 1, kind: output, shape index: {}]  }
   0x1   :  { %v8_v0 = vld [vmem:[%s547_s0] sm:$0xff]   ;;  %s263_s0 = smov 120   ;;  %s266_s18 = smov 96  }
   0x2   :  { %9 = vrot.lane.b32.xlu0 %v8_v0, %s263_s0  ;;  %33 = vrot.lane.b32.xlu1 %v8_v0, %s264_s8  ;;  %4 = vst.msk [vmem:[%s548_s1] ss:$16 sm:$0x3] %vm3_vm0, %v8_v0   ;;  %5 = vst.msk [vmem:[%s548_s1] ss:$16 sm:$0xc] %vm3_vm0, %v8_v0  }
   0x3   :  { %6 = vst.msk [vmem:[%s548_s1] ss:$16 sm:$0x30] %vm3_vm0, %v8_v0   ;;  %7 = vst.msk [vmem:[%s548_s1] ss:$16 sm:$0xc0] %vm3_vm0, %v8_v0  }
   0x4   :  { %s267_s19 = smov 88   ;;  %s268_s20 = smov 80  }
   0x5   :  { %s269_s21 = smov 72   ;;  %s270_s22 = smov 64  }
   0x6   :  { %21 = vrot.lane.b32.xlu0 %v8_v0, %s265_s17  ;;  %45 = vrot.lane.b32.xlu1 %v8_v0, %s266_s18  ;;  %s271_s23 = smov 56   ;;  %s272_s24 = smov 48  }
   0x7   :  { %s273_s25 = smov 40   ;;  %s274_s26 = smov 32  }
   0x8   :  { %s275_s27 = smov 24   ;;  %s276_s28 = smov 16  }
   0x9   :  { %s277_s29 = smov 8  }
   0xa   :  { %57 = vrot.lane.b32.xlu0 %v8_v0, %s267_s19  ;;  %69 = vrot.lane.b32.xlu1 %v8_v0, %s268_s20 }
   0xe   :  { %81 = vrot.lane.b32.xlu0 %v8_v0, %s269_s21  ;;  %93 = vrot.lane.b32.xlu1 %v8_v0, %s270_s22 }
  0x12   :  { %105 = vrot.lane.b32.xlu0 %v8_v0, %s271_s23  ;;  %117 = vrot.lane.b32.xlu1 %v8_v0, %s272_s24 }
  0x16   :  { %129 = vrot.lane.b32.xlu0 %v8_v0, %s273_s25  ;;  %141 = vrot.lane.b32.xlu1 %v8_v0, %s274_s26 }
  0x1a   :  { %153 = vrot.lane.b32.xlu0 %v8_v0, %s275_s27  ;;  %165 = vrot.lane.b32.xlu1 %v8_v0, %s276_s28 }
  0x1e   :  { %177 = vrot.lane.b32.xlu0 %v8_v0, %s277_s29 }
  0x74   :  { %v10_v1 = vpop.permute.xlu0 %9   ;;  %v34_v2 = vpop.permute.xlu1 %33  }
  0x75   :  { %188 = vst.msk [vmem:[%s548_s1 + $0x1] ss:$16 sm:$0x3] %vm3_vm0, %v10_v1   ;;  %189 = vst.msk [vmem:[%s548_s1 + $0x1] ss:$16 sm:$0xc] %vm3_vm0, %v10_v1  }
  0x76   :  { %190 = vst.msk [vmem:[%s548_s1 + $0x1] ss:$16 sm:$0x30] %vm3_vm0, %v10_v1   ;;  %191 = vst.msk [vmem:[%s548_s1 + $0x1] ss:$16 sm:$0xc0] %vm3_vm0, %v10_v1  }
  0x77   :  { %196 = vst.msk [vmem:[%s548_s1 + $0x3] ss:$16 sm:$0x3] %vm3_vm0, %v34_v2   ;;  %197 = vst.msk [vmem:[%s548_s1 + $0x3] ss:$16 sm:$0xc] %vm3_vm0, %v34_v2  }
  0x78   :  { %198 = vst.msk [vmem:[%s548_s1 + $0x3] ss:$16 sm:$0x30] %vm3_vm0, %v34_v2   ;;  %199 = vst.msk [vmem:[%s548_s1 + $0x3] ss:$16 sm:$0xc0] %vm3_vm0, %v34_v2   ;;  %v22_v3 = vpop.permute.xlu0 %21   ;;  %v46_v4 = vpop.permute.xlu1 %45  }
  0x79   :  { %192 = vst.msk [vmem:[%s548_s1 + $0x2] ss:$16 sm:$0x3] %vm3_vm0, %v22_v3   ;;  %193 = vst.msk [vmem:[%s548_s1 + $0x2] ss:$16 sm:$0xc] %vm3_vm0, %v22_v3  }
  0x7a   :  { %194 = vst.msk [vmem:[%s548_s1 + $0x2] ss:$16 sm:$0x30] %vm3_vm0, %v22_v3   ;;  %195 = vst.msk [vmem:[%s548_s1 + $0x2] ss:$16 sm:$0xc0] %vm3_vm0, %v22_v3  }
  0x7b   :  { %200 = vst.msk [vmem:[%s548_s1 + $0x4] ss:$16 sm:$0x3] %vm3_vm0, %v46_v4   ;;  %201 = vst.msk [vmem:[%s548_s1 + $0x4] ss:$16 sm:$0xc] %vm3_vm0, %v46_v4  }
  0x7c   :  { %202 = vst.msk [vmem:[%s548_s1 + $0x4] ss:$16 sm:$0x30] %vm3_vm0, %v46_v4   ;;  %203 = vst.msk [vmem:[%s548_s1 + $0x4] ss:$16 sm:$0xc0] %vm3_vm0, %v46_v4   ;;  %v58_v5 = vpop.permute.xlu0 %57   ;;  %v70_v6 = vpop.permute.xlu1 %69  }
  0x7d   :  { %204 = vst.msk [vmem:[%s548_s1 + $0x5] ss:$16 sm:$0x3] %vm3_vm0, %v58_v5   ;;  %205 = vst.msk [vmem:[%s548_s1 + $0x5] ss:$16 sm:$0xc] %vm3_vm0, %v58_v5  }
  0x7e   :  { %206 = vst.msk [vmem:[%s548_s1 + $0x5] ss:$16 sm:$0x30] %vm3_vm0, %v58_v5   ;;  %207 = vst.msk [vmem:[%s548_s1 + $0x5] ss:$16 sm:$0xc0] %vm3_vm0, %v58_v5  }
  0x7f   :  { %208 = vst.msk [vmem:[%s548_s1 + $0x6] ss:$16 sm:$0x3] %vm3_vm0, %v70_v6   ;;  %209 = vst.msk [vmem:[%s548_s1 + $0x6] ss:$16 sm:$0xc] %vm3_vm0, %v70_v6  }
  0x80   :  { %210 = vst.msk [vmem:[%s548_s1 + $0x6] ss:$16 sm:$0x30] %vm3_vm0, %v70_v6   ;;  %211 = vst.msk [vmem:[%s548_s1 + $0x6] ss:$16 sm:$0xc0] %vm3_vm0, %v70_v6   ;;  %v82_v7 = vpop.permute.xlu0 %81   ;;  %v94_v8 = vpop.permute.xlu1 %93  }
  0x81   :  { %212 = vst.msk [vmem:[%s548_s1 + $0x7] ss:$16 sm:$0x3] %vm3_vm0, %v82_v7   ;;  %213 = vst.msk [vmem:[%s548_s1 + $0x7] ss:$16 sm:$0xc] %vm3_vm0, %v82_v7  }
  0x82   :  { %214 = vst.msk [vmem:[%s548_s1 + $0x7] ss:$16 sm:$0x30] %vm3_vm0, %v82_v7   ;;  %215 = vst.msk [vmem:[%s548_s1 + $0x7] ss:$16 sm:$0xc0] %vm3_vm0, %v82_v7  }
  0x83   :  { %216 = vst.msk [vmem:[%s548_s1 + $0x8] ss:$16 sm:$0x3] %vm3_vm0, %v94_v8   ;;  %217 = vst.msk [vmem:[%s548_s1 + $0x8] ss:$16 sm:$0xc] %vm3_vm0, %v94_v8  }
  0x84   :  { %218 = vst.msk [vmem:[%s548_s1 + $0x8] ss:$16 sm:$0x30] %vm3_vm0, %v94_v8   ;;  %219 = vst.msk [vmem:[%s548_s1 + $0x8] ss:$16 sm:$0xc0] %vm3_vm0, %v94_v8   ;;  %v106_v9 = vpop.permute.xlu0 %105   ;;  %v118_v10 = vpop.permute.xlu1 %117  }
  0x85   :  { %220 = vst.msk [vmem:[%s548_s1 + $0x9] ss:$16 sm:$0x3] %vm3_vm0, %v106_v9   ;;  %221 = vst.msk [vmem:[%s548_s1 + $0x9] ss:$16 sm:$0xc] %vm3_vm0, %v106_v9  }
  0x86   :  { %222 = vst.msk [vmem:[%s548_s1 + $0x9] ss:$16 sm:$0x30] %vm3_vm0, %v106_v9   ;;  %223 = vst.msk [vmem:[%s548_s1 + $0x9] ss:$16 sm:$0xc0] %vm3_vm0, %v106_v9  }
  0x87   :  { %224 = vst.msk [vmem:[%s548_s1 + $0xa] ss:$16 sm:$0x3] %vm3_vm0, %v118_v10   ;;  %225 = vst.msk [vmem:[%s548_s1 + $0xa] ss:$16 sm:$0xc] %vm3_vm0, %v118_v10  }
  0x88   :  { %226 = vst.msk [vmem:[%s548_s1 + $0xa] ss:$16 sm:$0x30] %vm3_vm0, %v118_v10   ;;  %227 = vst.msk [vmem:[%s548_s1 + $0xa] ss:$16 sm:$0xc0] %vm3_vm0, %v118_v10   ;;  %v130_v11 = vpop.permute.xlu0 %129   ;;  %v142_v12 = vpop.permute.xlu1 %141  }
  0x89   :  { %228 = vst.msk [vmem:[%s548_s1 + $0xb] ss:$16 sm:$0x3] %vm3_vm0, %v130_v11   ;;  %229 = vst.msk [vmem:[%s548_s1 + $0xb] ss:$16 sm:$0xc] %vm3_vm0, %v130_v11  }
  0x8a   :  { %230 = vst.msk [vmem:[%s548_s1 + $0xb] ss:$16 sm:$0x30] %vm3_vm0, %v130_v11   ;;  %231 = vst.msk [vmem:[%s548_s1 + $0xb] ss:$16 sm:$0xc0] %vm3_vm0, %v130_v11  }
  0x8b   :  { %232 = vst.msk [vmem:[%s548_s1 + $0xc] ss:$16 sm:$0x3] %vm3_vm0, %v142_v12   ;;  %233 = vst.msk [vmem:[%s548_s1 + $0xc] ss:$16 sm:$0xc] %vm3_vm0, %v142_v12  }
  0x8c   :  { %234 = vst.msk [vmem:[%s548_s1 + $0xc] ss:$16 sm:$0x30] %vm3_vm0, %v142_v12   ;;  %235 = vst.msk [vmem:[%s548_s1 + $0xc] ss:$16 sm:$0xc0] %vm3_vm0, %v142_v12   ;;  %v154_v13 = vpop.permute.xlu0 %153   ;;  %v166_v14 = vpop.permute.xlu1 %165  }
  0x8d   :  { %236 = vst.msk [vmem:[%s548_s1 + $0xd] ss:$16 sm:$0x3] %vm3_vm0, %v154_v13   ;;  %237 = vst.msk [vmem:[%s548_s1 + $0xd] ss:$16 sm:$0xc] %vm3_vm0, %v154_v13  }
  0x8e   :  { %238 = vst.msk [vmem:[%s548_s1 + $0xd] ss:$16 sm:$0x30] %vm3_vm0, %v154_v13   ;;  %239 = vst.msk [vmem:[%s548_s1 + $0xd] ss:$16 sm:$0xc0] %vm3_vm0, %v154_v13  }
  0x8f   :  { %240 = vst.msk [vmem:[%s548_s1 + $0xe] ss:$16 sm:$0x3] %vm3_vm0, %v166_v14   ;;  %241 = vst.msk [vmem:[%s548_s1 + $0xe] ss:$16 sm:$0xc] %vm3_vm0, %v166_v14  }
  0x90   :  { %242 = vst.msk [vmem:[%s548_s1 + $0xe] ss:$16 sm:$0x30] %vm3_vm0, %v166_v14   ;;  %243 = vst.msk [vmem:[%s548_s1 + $0xe] ss:$16 sm:$0xc0] %vm3_vm0, %v166_v14   ;;  %v178_v15 = vpop.permute.xlu0 %177  }
  0x91   :  { %244 = vst.msk [vmem:[%s548_s1 + $0xf] ss:$16 sm:$0x3] %vm3_vm0, %v178_v15   ;;  %245 = vst.msk [vmem:[%s548_s1 + $0xf] ss:$16 sm:$0xc] %vm3_vm0, %v178_v15  }
  0x92   :  { %246 = vst.msk [vmem:[%s548_s1 + $0xf] ss:$16 sm:$0x30] %vm3_vm0, %v178_v15   ;;  %247 = vst.msk [vmem:[%s548_s1 + $0xf] ss:$16 sm:$0xc0] %vm3_vm0, %v178_v15  }

// kernel: ac_conv_down_forward.2
= control target key start
LH: loop header
LB: loop body
LE: loop exit
PB: predicated region body
PF: predicated region fallthrough
CT: control target
= control target key end

     0   :  { %s531_s12 = smov 0   ;;  %s533_s13 = smov 0   ;;  %s570_s0 = inlined_call_operand.vmem [shape: f32[2,8,12], index: 0, kind: input, shape index: {}]   ;;  %s571_s1 = inlined_call_operand.vmem [shape: f32[2,8,1], index: 1, kind: input, shape index: {}]   ;;  %s572_s2 = inlined_call_operand.vmem [shape: f32[2,12,128], index: 2, kind: input, shape index: {}]   ;;  %s573_s3 = inlined_call_operand.vmem [shape: f32[2,8,128], index: 3, kind: output, shape index: {}]  }
   0x1   :  { %s535_s14 = smov 0  }
   0x2 LB: > { %s25_s15 = sadd.s32 1, %s500_s13  ;;  %p427_p0 = scmp.ge.s32.totalorder %s504_s14, 1  ;;  %s504_s14 = sphi %s535_s14, %s13_s14   ;;  %s500_s13 = sphi %s533_s13, %s575_s13   ;;  %s496_s12 = sphi %s531_s12, %s574_s12  }
   0x3   : > { %p27_p1 = scmp.ge.s32.totalorder %s25_s15, 2  ;;  %p174_p2 = scmp.lt.s32.totalorder %s504_s14, 3 }
   0x5   : > { %s577_s15 = smov (%p27_p1, %s25_s15), 0  ;;  %p175_p3 = pnand %p427_p0, %p174_p2 }
   0x6   : > { %p211_p4 = scmp.lt.s32.totalorder (!%p175_p3), %s496_s12, 1  ;;  %v506_v0 = vmov (!%p175_p3), 0.0|0.0   ;;  %vm507_vm0 = vmmov (!%p175_p3), 0   ;;  %v508_v1 = vmov (!%p175_p3), 0.0   ;;  %v509_v2 = vmov (!%p175_p3), 0  }
   0x7   : > { %178 = sbr.rel (%p175_p3) target bundleno = 238 (0xee), region = 32  ;;  %448 = vmatprep.subr.bf16.mxu0 (!%p175_p3), %v506_v0  ;;  %445 = vmatprep.mubr.msk.f32.mxu0 (!%p175_p3), %vm507_vm0, %v508_v1  ;;  %vm247_vm1 = vcmask (!%p175_p3), 1043456   ;;  %vm510_vm2 = vmmov (!%p175_p3), 1   ;;  %vm243_vm4 = vcmask (!%p175_p3), 97280  }
   0x8   : > { %481 = vset.pattern.permute.xlu0 (!%p175_p3), %v509_v2  ;;  %vm450_vm3 = vmpackc.low (!%p175_p3), %vm247_vm1, %vm510_vm2 }
   0xe   : > { %s579_s12 = smov (!%p211_p4, %s496_s12), 1 }
   0xf   : > { %s437_s16 = sshll.u32 %s579_s12, 4  ;;  %s428_s17 = sshll.u32 %s579_s12, 3 }
  0x10   : > { %s226_s20 = scalar_lea.vmem %s572_s2, %s437_s16  ;;  %s214_s23 = scalar_lea.vmem %s570_s0, %s428_s17 }
  0x11   : > { %v235_v3 = vld [vmem:[%s226_s20] sm:$0xff]  ;;  %v236_v4 = vld [vmem:[%s226_s20 + $0x8] sm:$0xf]  ;;  %s218_s26 = scalar_lea.vmem %s571_s1, %s428_s17  ;;  %s233_s29 = scalar_lea.vmem %s573_s3, %s428_s17 }
  0x12   : > { %v449_v5 = vpack.c.bf16 %v236_v4, %v235_v3  ;;  %v237_v6 = vld [vmem:[%s218_s26] sm:$0xff] }
  0x13   : > { %240 = vperm.xlu0 %481, %v237_v6   ;;  %v234_v7 = vld [vmem:[%s214_s23] sm:$0xff] }
  0x14   : > { %451 = vmatpush3.bf16.msk.msra.mxu0 %vm450_vm3, %v449_v5 }
  0x17   : > { %446 = vmatmul.mubr.msk.f32.vlgmr.msra.gmra.mrb[0].mxu0 %vm243_vm4, %v234_v7 }
  0x92   : > { %v241_v8 = vpop.permute.xlu0 %240 }
  0xea   : > { %v317_v9 = vpop.f32.mrb[0].mxu0 }
  0xeb   : > { %v318_v10 = vadd.f32 %v317_v9, %v241_v8  ;;  %v447_v11 = vpop.f32.mrb[1].mxu0 }
  0xed   : > { %321 = vst [vmem:[%s233_s29] sm:$0xff] %v318_v10 }
  0xee PF: > { %s13_s14 = sadd.s32 1, %s504_s14   ;;  %s574_s12 = smov %s500_s13 }
  0xef   : > { %p10_p5 = scmp.ge.s32.totalorder %s13_s14, 4   ;;  %s575_s13 = smov %s577_s15 }
  0xf1   :  { %12 = sbr.rel (!%p10_p5) target bundleno = 2 (0x2), region = 68 }

// kernel: ac_conv_down_forward.3
= control target key start
LH: loop header
LB: loop body
LE: loop exit
PB: predicated region body
PF: predicated region fallthrough
CT: control target
= control target key end

     0   :  { %s526_s12 = smov 0   ;;  %s528_s13 = smov 0   ;;  %s565_s0 = inlined_call_operand.vmem [shape: f32[2,8,24], index: 0, kind: input, shape index: {}]   ;;  %s566_s1 = inlined_call_operand.vmem [shape: f32[2,8,1], index: 1, kind: input, shape index: {}]   ;;  %s567_s2 = inlined_call_operand.vmem [shape: f32[2,24,128], index: 2, kind: input, shape index: {}]   ;;  %s568_s3 = inlined_call_operand.vmem [shape: f32[2,8,128], index: 3, kind: output, shape index: {}]  }
   0x1   :  { %s530_s14 = smov 0  }
   0x2 LB: > { %s25_s15 = sadd.s32 1, %s496_s13  ;;  %p424_p0 = scmp.ge.s32.totalorder %s500_s14, 1  ;;  %s500_s14 = sphi %s530_s14, %s13_s14   ;;  %s496_s13 = sphi %s528_s13, %s570_s13   ;;  %s492_s12 = sphi %s526_s12, %s569_s12  }
   0x3   : > { %p27_p1 = scmp.ge.s32.totalorder %s25_s15, 2  ;;  %p174_p2 = scmp.lt.s32.totalorder %s500_s14, 3 }
   0x5   : > { %s572_s15 = smov (%p27_p1, %s25_s15), 0  ;;  %p175_p3 = pnand %p424_p0, %p174_p2 }
   0x6   : > { %p211_p4 = scmp.lt.s32.totalorder (!%p175_p3), %s492_s12, 1  ;;  %v502_v0 = vmov (!%p175_p3), 0.0|0.0   ;;  %vm503_vm0 = vmmov (!%p175_p3), 0   ;;  %v504_v1 = vmov (!%p175_p3), 0.0   ;;  %v505_v2 = vmov (!%p175_p3), 0  }
   0x7   : > { %178 = sbr.rel (%p175_p3) target bundleno = 241 (0xf1), region = 32  ;;  %445 = vmatprep.subr.bf16.mxu0 (!%p175_p3), %v502_v0  ;;  %442 = vmatprep.mubr.msk.f32.mxu0 (!%p175_p3), %vm503_vm0, %v504_v1  ;;  %vm244_vm1 = vcmask (!%p175_p3), 195584  }
   0x8   : > { %477 = vset.pattern.permute.xlu0 (!%p175_p3), %v505_v2 }
   0xe   : > { %s574_s12 = smov (!%p211_p4, %s492_s12), 1 }
   0xf   : > { %s448_s16 = smul.u32 24, %s574_s12  ;;  %s425_s17 = sshll.u32 %s574_s12, 3 }
  0x10   : > { %s218_s20 = scalar_lea.vmem %s566_s1, %s425_s17  ;;  %s214_s26 = scalar_lea.vmem %s565_s0, %s425_s17 }
  0x11   : > { %s226_s23 = scalar_lea.vmem %s567_s2, %s448_s16  ;;  %v238_v3 = vld [vmem:[%s218_s20] sm:$0xff]  ;;  %s233_s29 = scalar_lea.vmem %s568_s3, %s425_s17 }
  0x12   : > { %v235_v4 = vld [vmem:[%s226_s23] sm:$0xff]  ;;  %v236_v5 = vld [vmem:[%s226_s23 + $0x8] sm:$0xff]  ;;  %241 = vperm.xlu0 %477, %v238_v3   ;;  %v237_v7 = vld [vmem:[%s226_s23 + $0x10] sm:$0xff] }
  0x13   : > { %v446_v6 = vpack.c.bf16 %v236_v5, %v235_v4  ;;  %v234_v8 = vld [vmem:[%s214_s26] sm:$0xff] }
  0x15   : > { %447 = vmatpush3.bf16.msra.mxu0 %v446_v6 }
  0x16   : > { %440 = vmatprep.subr.mxu0 %v504_v1 }
  0x19   : > { %441 = vmatpush3.msra.mxu0 %v237_v7 }
  0x1a   : > { %443 = vmatmul.mubr.msk.f32.vlgmr.msra.gmra.mrb[0].mxu0 %vm244_vm1, %v234_v8 }
  0x91   : > { %v242_v9 = vpop.permute.xlu0 %241 }
  0xed   : > { %v314_v10 = vpop.f32.mrb[0].mxu0 }
  0xee   : > { %v315_v11 = vadd.f32 %v314_v10, %v242_v9  ;;  %v444_v12 = vpop.f32.mrb[1].mxu0 }
  0xf0   : > { %318 = vst [vmem:[%s233_s29] sm:$0xff] %v315_v11 }
  0xf1 PF: > { %s13_s14 = sadd.s32 1, %s500_s14   ;;  %s569_s12 = smov %s496_s13 }
  0xf2   : > { %p10_p5 = scmp.ge.s32.totalorder %s13_s14, 4   ;;  %s570_s13 = smov %s572_s15 }
  0xf4   :  { %12 = sbr.rel (!%p10_p5) target bundleno = 2 (0x2), region = 68 }

</bundles_post_ra>
